<compile_context>
chip_gen: v7x
topology: tpu7x:2x2x1
jax: 0.10.0
libtpu: 0.0.40
codegen_flags: <defaults>
</compile_context>

<pallas_src>
import functools

import jax
import jax.numpy as jnp
from jax.experimental import pallas as pl
from jax.experimental.pallas import tpu as pltpu


def _round_up(x, m):
    return ((x + m - 1) // m) * m


@functools.lru_cache(maxsize=None)
def _tensorcores_per_device():
    """Best-effort count of TensorCores sharing one Pallas grid (megacore)."""
    try:
        kind = jax.devices()[0].device_kind.lower()
    except Exception:
        return 1
    # v4 / v5p (megacore) and v7x expose 2 TensorCores behind one device and
    # shard "parallel" grid axes across them; v5e / v6e have a single TC.
    if any(tag in kind for tag in ("v4", "v5p", "v7", "7x")):
        return 2
    return 1


# ----------------------------------------------------------------------------
# Kernels
# ----------------------------------------------------------------------------
def _mlp_kernel_batch_major(x_ref,
                            w1_ref, b1_ref, w2_ref, b2_ref,
                            w3_ref, b3_ref, w4_ref, b4_ref,
                            o_ref):
    """y = tanh(tanh(tanh(tanh(xW1+b1)W2+b2)W3+b3)W4+b4), x: (block_m, feat)."""
    h = x_ref[...]
    for w_ref, b_ref in ((w1_ref, b1_ref), (w2_ref, b2_ref),
                         (w3_ref, b3_ref), (w4_ref, b4_ref)):
        # MXU matmul in the weights' dtype with f32 accumulation; bias-add and
        # tanh stay f32 (VPU/EUP) which is required on v5e, harmless elsewhere.
        pre = jnp.dot(h.astype(w_ref.dtype), w_ref[...],
                      preferred_element_type=jnp.float32)
        h = jnp.tanh(pre + b_ref[...].astype(jnp.float32))
    o_ref[...] = h.astype(o_ref.dtype)


def _mlp_kernel_feature_major(x_ref,
                              w1_ref, b1_ref, w2_ref, b2_ref,
                              w3_ref, b3_ref, w4_ref, b4_ref,
                              o_ref):
    """Lane-dense variant: x (feat, block_n), W (out, in), y = tanh(W h + b)."""
    h = x_ref[...]                                    # (features, block_n)
    for w_ref, b_ref in ((w1_ref, b1_ref), (w2_ref, b2_ref),
                         (w3_ref, b3_ref), (w4_ref, b4_ref)):
        pre = jnp.dot(w_ref[...], h.astype(w_ref.dtype),
                      preferred_element_type=jnp.float32)
        h = jnp.tanh(pre + b_ref[...].astype(jnp.float32))   # b: (out, 1)
    o_ref[...] = h.astype(o_ref.dtype)


def _resident_spec(arr):
    # Whole array as one block with a constant index_map: stays resident in
    # VMEM across every batch tile.
    return pl.BlockSpec(arr.shape, lambda i, _nd=arr.ndim: (0,) * _nd)


# ----------------------------------------------------------------------------
# Wrappers
# ----------------------------------------------------------------------------
def net_forward(x, params, *, block_m=None, max_block_m=1024):
    """Batch-major fused MLP: x (batch, n_feature) -> (batch, n_output).

    params: 4 tuples (w, b), w stored (in, out), b stored (1, out) — i.e.
    PyTorch's nn.Linear weight transposed so y = x @ W + b is identical math.
    Output dtype follows x (bf16 in -> bf16 out).
    """
    (w1, b1), (w2, b2), (w3, b3), (w4, b4) = params
    batch, n_feature = x.shape
    n_output = w4.shape[1]

    if block_m is None:
        ncores = _tensorcores_per_device()
        if batch > max_block_m:
            block_m = max_block_m            # large batches: 1K-row tiles
        elif ncores >= 2 and batch >= 64:
            # Split into exactly two tiles so both TensorCores (v7x/v4/v5p)
            # get work; one extra grid step is only ~0.35 us.
            block_m = _round_up(pl.cdiv(batch, 2), 8)
        else:
            block_m = batch                  # single block, no pipeline bubbles

    grid = (pl.cdiv(batch, block_m),)
    # NOTE: block_m need not divide batch.  Pallas pads the ragged last tile;
    # padded rows are row-independent garbage and the blocked out_spec masks
    # their stores, so no jnp.pad / out-slice HBM copies are needed.

    return pl.pallas_call(
        _mlp_kernel_batch_major,
        out_shape=jax.ShapeDtypeStruct((batch, n_output), x.dtype),
        grid_spec=pltpu.PrefetchScalarGridSpec(
            num_scalar_prefetch=0,
            grid=grid,
            in_specs=[
                pl.BlockSpec((block_m, n_feature), lambda i: (i, 0)),
                _resident_spec(w1), _resident_spec(b1),
                _resident_spec(w2), _resident_spec(b2),
                _resident_spec(w3), _resident_spec(b3),
                _resident_spec(w4), _resident_spec(b4),
            ],
            out_specs=pl.BlockSpec((block_m, n_output), lambda i: (i, 0)),
        ),
        compiler_params=pltpu.CompilerParams(
            dimension_semantics=("parallel",)),
    )(x, w1, b1, w2, b2, w3, b3, w4, b4)


def net_forward_feature_major(x_t, params_t, *, block_n=None, max_block_n=2048):
    """Lane-dense fused MLP: x_t (n_feature, batch) -> (n_output, batch).

    params_t: 4 tuples (w, b), w stored (out, in) (PyTorch-native), b (out, 1).
    Batch lives on the 128-lane axis, so activation tiles are lane-dense and
    output stores are unmasked full-width vst.  Use only when the producer /
    consumer already supply / accept the transposed layout.
    """
    (w1, b1), (w2, b2), (w3, b3), (w4, b4) = params_t
    n_feature, batch = x_t.shape
    n_output = w4.shape[0]

    if block_n is None:
        ncores = _tensorcores_per_device()
        if batch > max_block_n:
            block_n = max_block_n
        elif ncores >= 2 and batch >= 256:
            block_n = _round_up(pl.cdiv(batch, 2), 128)   # two lane-tiles
        else:
            block_n = batch                               # single block
    grid = (pl.cdiv(batch, block_n),)

    return pl.pallas_call(
        _mlp_kernel_feature_major,
        out_shape=jax.ShapeDtypeStruct((n_output, batch), x_t.dtype),
        grid_spec=pltpu.PrefetchScalarGridSpec(
            num_scalar_prefetch=0,
            grid=grid,
            in_specs=[
                pl.BlockSpec((n_feature, block_n), lambda i: (0, i)),
                _resident_spec(w1), _resident_spec(b1),
                _resident_spec(w2), _resident_spec(b2),
                _resident_spec(w3), _resident_spec(b3),
                _resident_spec(w4), _resident_spec(b4),
            ],
            out_specs=pl.BlockSpec((n_output, block_n), lambda i: (0, i)),
        ),
        compiler_params=pltpu.CompilerParams(
            dimension_semantics=("parallel",)),
    )(x_t, w1, b1, w2, b2, w3, b3, w4, b4)


# ----------------------------------------------------------------------------
# Init / reference
# ----------------------------------------------------------------------------
def init_linear(key, fan_in, fan_out, w_dtype=jnp.float32):
    """PyTorch nn.Linear-style U(-1/sqrt(fan_in), 1/sqrt(fan_in)) init.

    Weight returned as (in, out); bias as (1, out) and always f32 (no
    bandwidth win from narrow biases, only lost precision)."""
    kw, kb = jax.random.split(key)
    bound = 1.0 / (fan_in ** 0.5)
    w = jax.random.uniform(kw, (fan_in, fan_out), jnp.float32, -bound, bound)
    b = jax.random.uniform(kb, (1, fan_out), jnp.float32, -bound, bound)
    return w.astype(w_dtype), b


def reference_forward(x, params):
    """Plain-JAX reference mirroring the kernel's dtype handling exactly."""
    h = x
    for w, b in params:
        pre = jnp.dot(h.astype(w.dtype), w, preferred_element_type=jnp.float32)
        h = jnp.tanh(pre + b.astype(jnp.float32))
    return h


# ----------------------------------------------------------------------------
if __name__ == "__main__":
    key = jax.random.PRNGKey(0)
    # Shapes consistent with the module's constructor args.
    n_feature, n_h1, n_h2, n_h3, n_output = 32, 64, 64, 32, 8
    k_x, k1, k2, k3, k4, k_big, k_t = jax.random.split(key, 7)

    params = (
        init_linear(k1, n_feature, n_h1),
        init_linear(k2, n_h1, n_h2),
        init_linear(k3, n_h2, n_h3),
        init_linear(k4, n_h3, n_output),
    )

    # --- 1. small batch, f32, batch-major (matches the PyTorch interface) ---
    batch = 16
    x = jax.random.normal(k_x, (batch, n_feature), jnp.float32)
    out = jax.block_until_ready(net_forward(x, params))
    ref = reference_forward(x, params)
    assert out.shape == (batch, n_output)
    assert jnp.allclose(out, ref, atol=1e-4, rtol=1e-4), "f32 batch-major mismatch"

    # --- 2. large non-divisible batch, bf16 x/y + bf16 weights, f32 biases.
    #        Ragged last tile handled by Pallas (no jnp.pad / out-slice). -----
    big_batch = 1500
    params_bf16 = tuple((w.astype(jnp.bfloat16), b) for w, b in params)  # b stays f32
    x_big = jax.random.normal(k_big, (big_batch, n_feature),
                              jnp.float32).astype(jnp.bfloat16)
    out_big = jax.block_until_ready(net_forward(x_big, params_bf16))
    ref_big = reference_forward(x_big, params_bf16)
    assert out_big.shape == (big_batch, n_output)
    assert out_big.dtype == jnp.bfloat16
    assert jnp.allclose(out_big.astype(jnp.float32), ref_big.astype(jnp.float32),
                        atol=2e-2, rtol=2e-2), "bf16 batch-major mismatch"

    # --- 3. lane-dense feature-major path: x produced directly as
    #        (n_feature, batch), weights PyTorch-native (out, in), output
    #        (n_output, batch); ragged last lane-tile (2500 % 2048 != 0). -----
    t_batch = 2500
    x_t = jax.random.normal(k_t, (n_feature, t_batch), jnp.float32)
    params_t = tuple((w.T, b.T) for w, b in params)        # (out,in), (out,1)
    out_t = jax.block_until_ready(net_forward_feature_major(x_t, params_t))
    ref_t = reference_forward(x_t.T, params).T
    assert out_t.shape == (n_output, t_batch)
    assert jnp.allclose(out_t, ref_t, atol=1e-4, rtol=1e-4), "feature-major mismatch"

    print("KERNEL_OK")
</pallas_src>

<mosaic_0001>
module attributes {stable_mosaic.version = 11 : i64} {
  func.func @_mlp_kernel_batch_major(%arg0: i32, %arg1: memref<16x32xf32, #tpu.memory_space<vmem>>, %arg2: memref<32x64xf32, #tpu.memory_space<vmem>>, %arg3: memref<1x64xf32, #tpu.memory_space<vmem>>, %arg4: memref<64x64xf32, #tpu.memory_space<vmem>>, %arg5: memref<1x64xf32, #tpu.memory_space<vmem>>, %arg6: memref<64x32xf32, #tpu.memory_space<vmem>>, %arg7: memref<1x32xf32, #tpu.memory_space<vmem>>, %arg8: memref<32x8xf32, #tpu.memory_space<vmem>>, %arg9: memref<1x8xf32, #tpu.memory_space<vmem>>, %arg10: memref<16x8xf32, #tpu.memory_space<vmem>>) attributes {dimension_semantics = [#tpu.dimension_semantics<parallel>], iteration_bounds = array<i64: 1>, scalar_prefetch = 0 : i64, scratch_operands = 0 : i64, tpu.core_type = #tpu.core_type<tc>, window_params = [{transform_indices = @transform_0, window_bounds = array<i64: 16, 32>}, {pipeline_mode = #tpu.pipeline_mode<synchronous>, transform_indices = @transform_1, window_bounds = array<i64: 32, 64>}, {pipeline_mode = #tpu.pipeline_mode<synchronous>, transform_indices = @transform_2, window_bounds = array<i64: 1, 64>}, {pipeline_mode = #tpu.pipeline_mode<synchronous>, transform_indices = @transform_3, window_bounds = array<i64: 64, 64>}, {pipeline_mode = #tpu.pipeline_mode<synchronous>, transform_indices = @transform_4, window_bounds = array<i64: 1, 64>}, {pipeline_mode = #tpu.pipeline_mode<synchronous>, transform_indices = @transform_5, window_bounds = array<i64: 64, 32>}, {pipeline_mode = #tpu.pipeline_mode<synchronous>, transform_indices = @transform_6, window_bounds = array<i64: 1, 32>}, {pipeline_mode = #tpu.pipeline_mode<synchronous>, transform_indices = @transform_7, window_bounds = array<i64: 32, 8>}, {pipeline_mode = #tpu.pipeline_mode<synchronous>, transform_indices = @transform_8, window_bounds = array<i64: 1, 8>}, {transform_indices = @transform_9, window_bounds = array<i64: 16, 8>}]} {
    %c0 = arith.constant 0 : index
    %c0_0 = arith.constant 0 : index
    %0 = vector.load %arg1[%c0, %c0_0] : memref<16x32xf32, #tpu.memory_space<vmem>>, vector<16x32xf32>
    %c0_1 = arith.constant 0 : index
    %c0_2 = arith.constant 0 : index
    %1 = vector.load %arg2[%c0_1, %c0_2] : memref<32x64xf32, #tpu.memory_space<vmem>>, vector<32x64xf32>
    %cst = arith.constant dense<0.000000e+00> : vector<16x64xf32>
    %2 = tpu.matmul %0, %1, %cst {dimension_numbers = #tpu.dot_dimension_numbers<[1], [0], [0], [1], [0, 0, 1, 1], [], []>} : vector<16x32xf32>, vector<32x64xf32>, vector<16x64xf32> -> vector<16x64xf32>
    %c0_3 = arith.constant 0 : index
    %c0_4 = arith.constant 0 : index
    %3 = vector.load %arg3[%c0_3, %c0_4] : memref<1x64xf32, #tpu.memory_space<vmem>>, vector<1x64xf32>
    %4 = vector.broadcast %3 : vector<1x64xf32> to vector<16x64xf32>
    %5 = arith.addf %2, %4 : vector<16x64xf32>
    %6 = math.tanh %5 : vector<16x64xf32>
    %c0_5 = arith.constant 0 : index
    %c0_6 = arith.constant 0 : index
    %7 = vector.load %arg4[%c0_5, %c0_6] : memref<64x64xf32, #tpu.memory_space<vmem>>, vector<64x64xf32>
    %cst_7 = arith.constant dense<0.000000e+00> : vector<16x64xf32>
    %8 = tpu.matmul %6, %7, %cst_7 {dimension_numbers = #tpu.dot_dimension_numbers<[1], [0], [0], [1], [0, 0, 1, 1], [], []>} : vector<16x64xf32>, vector<64x64xf32>, vector<16x64xf32> -> vector<16x64xf32>
    %c0_8 = arith.constant 0 : index
    %c0_9 = arith.constant 0 : index
    %9 = vector.load %arg5[%c0_8, %c0_9] : memref<1x64xf32, #tpu.memory_space<vmem>>, vector<1x64xf32>
    %10 = vector.broadcast %9 : vector<1x64xf32> to vector<16x64xf32>
    %11 = arith.addf %8, %10 : vector<16x64xf32>
    %12 = math.tanh %11 : vector<16x64xf32>
    %c0_10 = arith.constant 0 : index
    %c0_11 = arith.constant 0 : index
    %13 = vector.load %arg6[%c0_10, %c0_11] : memref<64x32xf32, #tpu.memory_space<vmem>>, vector<64x32xf32>
    %cst_12 = arith.constant dense<0.000000e+00> : vector<16x32xf32>
    %14 = tpu.matmul %12, %13, %cst_12 {dimension_numbers = #tpu.dot_dimension_numbers<[1], [0], [0], [1], [0, 0, 1, 1], [], []>} : vector<16x64xf32>, vector<64x32xf32>, vector<16x32xf32> -> vector<16x32xf32>
    %c0_13 = arith.constant 0 : index
    %c0_14 = arith.constant 0 : index
    %15 = vector.load %arg7[%c0_13, %c0_14] : memref<1x32xf32, #tpu.memory_space<vmem>>, vector<1x32xf32>
    %16 = vector.broadcast %15 : vector<1x32xf32> to vector<16x32xf32>
    %17 = arith.addf %14, %16 : vector<16x32xf32>
    %18 = math.tanh %17 : vector<16x32xf32>
    %c0_15 = arith.constant 0 : index
    %c0_16 = arith.constant 0 : index
    %19 = vector.load %arg8[%c0_15, %c0_16] : memref<32x8xf32, #tpu.memory_space<vmem>>, vector<32x8xf32>
    %cst_17 = arith.constant dense<0.000000e+00> : vector<16x8xf32>
    %20 = tpu.matmul %18, %19, %cst_17 {dimension_numbers = #tpu.dot_dimension_numbers<[1], [0], [0], [1], [0, 0, 1, 1], [], []>} : vector<16x32xf32>, vector<32x8xf32>, vector<16x8xf32> -> vector<16x8xf32>
    %c0_18 = arith.constant 0 : index
    %c0_19 = arith.constant 0 : index
    %21 = vector.load %arg9[%c0_18, %c0_19] : memref<1x8xf32, #tpu.memory_space<vmem>>, vector<1x8xf32>
    %22 = vector.broadcast %21 : vector<1x8xf32> to vector<16x8xf32>
    %23 = arith.addf %20, %22 : vector<16x8xf32>
    %24 = math.tanh %23 : vector<16x8xf32>
    %c0_20 = arith.constant 0 : index
    %c0_21 = arith.constant 0 : index
    %25 = vector.load %arg10[%c0_20, %c0_21] : memref<16x8xf32, #tpu.memory_space<vmem>>, vector<16x8xf32>
    tpu.vector_store %arg10[%c0_20, %c0_21], %24 {strides = array<i32>} : memref<16x8xf32, #tpu.memory_space<vmem>>, vector<16x8xf32>,
    return
  }
  func.func @transform_0(%arg0: i32) -> (i32, i32) {
    %c0_i32 = arith.constant 0 : i32
    %c0_i32_0 = arith.constant 0 : i32
    return %arg0, %c0_i32 : i32, i32
  }
  func.func @transform_1(%arg0: i32) -> (i32, i32) {
    %c0_i32 = arith.constant 0 : i32
    %c0_i32_0 = arith.constant 0 : i32
    %c0_i32_1 = arith.constant 0 : i32
    return %c0_i32, %c0_i32_0 : i32, i32
  }
  func.func @transform_2(%arg0: i32) -> (i32, i32) {
    %c0_i32 = arith.constant 0 : i32
    %c0_i32_0 = arith.constant 0 : i32
    %c0_i32_1 = arith.constant 0 : i32
    return %c0_i32, %c0_i32_0 : i32, i32
  }
  func.func @transform_3(%arg0: i32) -> (i32, i32) {
    %c0_i32 = arith.constant 0 : i32
    %c0_i32_0 = arith.constant 0 : i32
    %c0_i32_1 = arith.constant 0 : i32
    return %c0_i32, %c0_i32_0 : i32, i32
  }
  func.func @transform_4(%arg0: i32) -> (i32, i32) {
    %c0_i32 = arith.constant 0 : i32
    %c0_i32_0 = arith.constant 0 : i32
    %c0_i32_1 = arith.constant 0 : i32
    return %c0_i32, %c0_i32_0 : i32, i32
  }
  func.func @transform_5(%arg0: i32) -> (i32, i32) {
    %c0_i32 = arith.constant 0 : i32
    %c0_i32_0 = arith.constant 0 : i32
    %c0_i32_1 = arith.constant 0 : i32
    return %c0_i32, %c0_i32_0 : i32, i32
  }
  func.func @transform_6(%arg0: i32) -> (i32, i32) {
    %c0_i32 = arith.constant 0 : i32
    %c0_i32_0 = arith.constant 0 : i32
    %c0_i32_1 = arith.constant 0 : i32
    return %c0_i32, %c0_i32_0 : i32, i32
  }
  func.func @transform_7(%arg0: i32) -> (i32, i32) {
    %c0_i32 = arith.constant 0 : i32
    %c0_i32_0 = arith.constant 0 : i32
    %c0_i32_1 = arith.constant 0 : i32
    return %c0_i32, %c0_i32_0 : i32, i32
  }
  func.func @transform_8(%arg0: i32) -> (i32, i32) {
    %c0_i32 = arith.constant 0 : i32
    %c0_i32_0 = arith.constant 0 : i32
    %c0_i32_1 = arith.constant 0 : i32
    return %c0_i32, %c0_i32_0 : i32, i32
  }
  func.func @transform_9(%arg0: i32) -> (i32, i32) {
    %c0_i32 = arith.constant 0 : i32
    %c0_i32_0 = arith.constant 0 : i32
    return %arg0, %c0_i32 : i32, i32
  }
}

</mosaic_0001>

<bundles_post_ra>
// kernel: tpu_custom_call.1
= control target key start
LH: loop header
LB: loop body
LE: loop exit
PB: predicated region body
PF: predicated region fallthrough
CT: control target
= control target key end

     0   :  { %vm45_vm0 = vcmask 261120   ;;  %vm144_vm1 = vcmask 523264   ;;  %vm420_vm2 = vcmask 64512   ;;  %s749_s1 = inlined_call_operand.vmem [shape: f32[32,64], index: 1, kind: input, shape index: {}]   ;;  %s750_s0 = inlined_call_operand.vmem [shape: f32[16,32], index: 0, kind: input, shape index: {}]   ;;  %s751_s3 = inlined_call_operand.vmem [shape: f32[64,64], index: 3, kind: input, shape index: {}]   ;;  %s752_s2 = inlined_call_operand.vmem [shape: f32[1,64], index: 2, kind: input, shape index: {}]   ;;  %s753_s5 = inlined_call_operand.vmem [shape: f32[64,32], index: 5, kind: input, shape index: {}]   ;;  %s754_s4 = inlined_call_operand.vmem [shape: f32[1,64], index: 4, kind: input, shape index: {}]   ;;  %s755_s7 = inlined_call_operand.vmem [shape: f32[32,8], index: 7, kind: input, shape index: {}]   ;;  %s756_s6 = inlined_call_operand.vmem [shape: f32[1,32], index: 6, kind: input, shape index: {}]   ;;  %s757_s8 = inlined_call_operand.vmem [shape: f32[1,8], index: 8, kind: input, shape index: {}]   ;;  %s758_s9 = inlined_call_operand.vmem [shape: f32[16,8], index: 9, kind: output, shape index: {}]  }
   0x1   :  { %v34_v0 = vld [vmem:[%s749_s1] sm:$0xff]  ;;  %v35_v1 = vld [vmem:[%s749_s1 + $0x8] sm:$0xff]  ;;  %v36_v2 = vld [vmem:[%s749_s1 + $0x10] sm:$0xff] }
   0x2   :  { %v531_v3 = vpack.c.bf16 %v35_v1, %v34_v0  ;;  %v37_v4 = vld [vmem:[%s749_s1 + $0x18] sm:$0xff]  ;;  %v32_v5 = vld [vmem:[%s750_s0] sm:$0xff]  ;;  %v33_v7 = vld [vmem:[%s750_s0 + $0x8] sm:$0xff] }
   0x3   :  { %v535_v6 = vpack.c.bf16 %v37_v4, %v36_v2  ;;  %479 = vmatprep.mubr.msk.f32.mxu0 %vm45_vm0, %v32_v5  ;;  %v129_v8 = vld [vmem:[%s751_s3] sm:$0xff]  ;;  %v130_v9 = vld [vmem:[%s751_s3 + $0x8] sm:$0xff]  ;;  %v131_v11 = vld [vmem:[%s751_s3 + $0x10] sm:$0xff] }
   0x4   :  { %532 = vmatprep.subr.bf16.mxu0 %v531_v3  ;;  %v539_v10 = vpack.c.bf16 %v130_v9, %v129_v8  ;;  %v132_v12 = vld [vmem:[%s751_s3 + $0x18] sm:$0xff]  ;;  %v133_v14 = vld [vmem:[%s751_s3 + $0x20] sm:$0xff]  ;;  %v134_v15 = vld [vmem:[%s751_s3 + $0x28] sm:$0xff] }
   0x5   :  { %534 = vmatpush3.bf16.msra.mxu0 %v531_v3  ;;  %v543_v13 = vpack.c.bf16 %v132_v12, %v131_v11  ;;  %v135_v16 = vld [vmem:[%s751_s3 + $0x30] sm:$0xff]  ;;  %v547_v17 = vpack.c.bf16 %v134_v15, %v133_v14  ;;  %v136_v18 = vld [vmem:[%s751_s3 + $0x38] sm:$0xff]  ;;  %v427_v20 = vld [vmem:[%s752_s2] ss:$0 sm:$0xff] }
   0x6   :  { %536 = vmatprep.subr.bf16.mxu0 %v535_v6  ;;  %540 = vmatprep.subr.bf16.mxu1 %v539_v10  ;;  %v551_v19 = vpack.c.bf16 %v136_v18, %v135_v16  ;;  %v228_v27 = vld [vmem:[%s753_s5] sm:$0xff]  ;;  %v229_v28 = vld [vmem:[%s753_s5 + $0x8] sm:$0xff]  ;;  %v230_v30 = vld [vmem:[%s753_s5 + $0x10] sm:$0xff] }
   0x7   :  { %542 = vmatpush3.bf16.msra.mxu1 %v539_v10  ;;  %v555_v29 = vpack.c.bf16 %v229_v28, %v228_v27  ;;  %v231_v31 = vld [vmem:[%s753_s5 + $0x18] sm:$0xff]  ;;  %v232_v33 = vld [vmem:[%s753_s5 + $0x20] sm:$0xff]  ;;  %v233_v34 = vld [vmem:[%s753_s5 + $0x28] sm:$0xff] }
   0x8   :  { %544 = vmatprep.subr.bf16.mxu1 %v543_v13  ;;  %v559_v32 = vpack.c.bf16 %v231_v31, %v230_v30  ;;  %v234_v35 = vld [vmem:[%s753_s5 + $0x30] sm:$0xff]  ;;  %v563_v36 = vpack.c.bf16 %v233_v34, %v232_v33  ;;  %v235_v37 = vld [vmem:[%s753_s5 + $0x38] sm:$0xff]  ;;  %v430_v39 = vld [vmem:[%s754_s4] ss:$0 sm:$0xff] }
   0x9   :  { %538 = vmatpush3.bf16.msra.mxu0 %v535_v6  ;;  %v567_v38 = vpack.c.bf16 %v235_v37, %v234_v35  ;;  %v326_v46 = vld [vmem:[%s755_s7] sm:$0xff]  ;;  %v327_v47 = vld [vmem:[%s755_s7 + $0x8] sm:$0xff]  ;;  %v328_v48 = vld [vmem:[%s755_s7 + $0x10] sm:$0xff] }
   0xa   :  { %556 = vmatprep.subr.bf16.mxu0 %v555_v29  ;;  %v571_v49 = vpack.c.bf16 %v327_v47, %v326_v46  ;;  %v329_v50 = vld [vmem:[%s755_s7 + $0x18] sm:$0xff]  ;;  %v433_v52 = vld [vmem:[%s756_s6] ss:$0 sm:$0xff] }
   0xb   :  { %546 = vmatpush3.bf16.msra.mxu1 %v543_v13  ;;  %v575_v51 = vpack.c.bf16 %v329_v50, %v328_v48  ;;  %v436_v59 = vld [vmem:[%s757_s8] ss:$0 sm:$0xff] }
   0xc   :  { %480 = vmatmul.mubr.msk.f32.vlgmr.msra.gmra.mrb[0].mxu0 %vm45_vm0, %v33_v7  ;;  %548 = vmatprep.subr.bf16.mxu1 %v547_v17 }
   0xd   :  { %558 = vmatpush3.bf16.msra.mxu0 %v555_v29 }
   0xe   :  { %560 = vmatprep.subr.bf16.mxu0 %v559_v32 }
   0xf   :  { %550 = vmatpush3.bf16.msra.mxu1 %v547_v17 }
  0x10   :  { %552 = vmatprep.subr.bf16.mxu1 %v551_v19 }
  0x11   :  { %562 = vmatpush3.bf16.msra.mxu0 %v559_v32 }
  0x12   :  { %564 = vmatprep.subr.bf16.mxu0 %v563_v36 }
  0x13   :  { %554 = vmatpush3.bf16.msra.mxu1 %v551_v19 }
  0x14   :  { %572 = vmatprep.subr.bf16.mxu1 %v571_v49 }
  0x15   :  { %566 = vmatpush3.bf16.msra.mxu0 %v563_v36 }
  0x16   :  { %568 = vmatprep.subr.bf16.mxu0 %v567_v38 }
  0x19   :  { %570 = vmatpush3.bf16.msra.mxu0 %v567_v38 }
  0xdf   :  { %v481_v21 = vpop.f32.mrb[0].mxu0 }
  0xe0   :  { %v124_v22 = vadd.f32 %v481_v21, %v427_v20  ;;  %v118_v23 = vpop.f32.mrb[1].mxu0 }
  0xe1   :  { %v119_v24 = vadd.f32 %v427_v20, %v118_v23 }
  0xe3   :  { %579 = vtanh.f32 %v119_v24 }
  0xe4   :  { %581 = vtanh.f32 %v124_v22 }
  0xed   :  { %v580_v25 = vpop.eup %579 }
  0xee   :  { %v582_v26 = vpop.eup %581  ;;  %498 = vmatprep.mubr.msk.f32.mxu1 %vm144_vm1, %v580_v25 }
  0xef   :  { %499 = vmatmul.mubr.msk.f32.vlgmr.msra.gmra.mrb[0].mxu1 %vm144_vm1, %v582_v26 }
  0xf0   :  { %574 = vmatpush3.bf16.msra.mxu1 %v571_v49 }
  0xf1   :  { %576 = vmatprep.subr.bf16.mxu1 %v575_v51 }
  0xf4   :  { %578 = vmatpush3.bf16.msra.mxu1 %v575_v51 }
 0x1c2   :  { %v500_v40 = vpop.f32.mrb[0].mxu1 }
 0x1c3   :  { %v223_v41 = vadd.f32 %v500_v40, %v430_v39  ;;  %v217_v42 = vpop.f32.mrb[1].mxu1 }
 0x1c4   :  { %v218_v43 = vadd.f32 %v430_v39, %v217_v42 }
 0x1c6   :  { %583 = vtanh.f32 %v218_v43 }
 0x1c7   :  { %585 = vtanh.f32 %v223_v41 }
 0x1d0   :  { %v584_v44 = vpop.eup %583 }
 0x1d1   :  { %v586_v45 = vpop.eup %585  ;;  %517 = vmatprep.mubr.msk.f32.mxu0 %vm144_vm1, %v584_v44 }
 0x1d2   :  { %518 = vmatmul.mubr.msk.f32.vlgmr.msra.gmra.mrb[2].mxu0 %vm144_vm1, %v586_v45 }
 0x2a5   :  { %v519_v53 = vpop.f32.mrb[2].mxu0 }
 0x2a6   :  { %v321_v54 = vadd.f32 %v519_v53, %v433_v52  ;;  %v315_v55 = vpop.f32.mrb[3].mxu0 }
 0x2a7   :  { %v316_v56 = vadd.f32 %v433_v52, %v315_v55 }
 0x2a9   :  { %587 = vtanh.f32 %v316_v56 }
 0x2aa   :  { %589 = vtanh.f32 %v321_v54 }
 0x2b3   :  { %v588_v57 = vpop.eup %587 }
 0x2b4   :  { %v590_v58 = vpop.eup %589  ;;  %528 = vmatprep.mubr.msk.f32.mxu1 %vm45_vm0, %v588_v57 }
 0x2b5   :  { %529 = vmatmul.mubr.msk.f32.vlgmr.msra.gmra.mrb[2].mxu1 %vm45_vm0, %v590_v58 }
 0x388   :  { %v530_v60 = vpop.f32.mrb[2].mxu1 }
 0x389   :  { %v415_v61 = vadd.f32 %v530_v60, %v436_v59  ;;  %v409_v62 = vpop.f32.mrb[3].mxu1 }
 0x38a   :  { %v410_v63 = vadd.f32 %v436_v59, %v409_v62 }
 0x38b   :  { %591 = vtanh.f32 %v415_v61 }
 0x38c   :  { %593 = vtanh.f32 %v410_v63 }
 0x395   :  { %v592_v0 = vpop.eup %591 }
 0x396   :  { %v594_v1 = vpop.eup %593  ;;  %422 = vst.msk [vmem:[%s758_s9 + $0x8] sm:$0xff] %vm420_vm2, %v592_v0 }
 0x397   :  { %421 = vst.msk [vmem:[%s758_s9] sm:$0xff] %vm420_vm2, %v594_v1 }

</bundles_post_ra>
